<compile_context>
chip_gen: v7x
topology: tpu7x:2x2x1
jax: 0.10.0
libtpu: 0.0.40
codegen_flags: <defaults>
</compile_context>

<pallas_src>
import jax
import jax.numpy as jnp
from jax import lax
from jax.experimental import pallas as pl


def _tanh_kernel(x_ref, o_ref):
    # Whole (T, D) parameter resident in VMEM; one elementwise tanh (EUP).
    x = x_ref[...]
    if x.dtype == jnp.float32:
        o_ref[...] = jnp.tanh(x)
    else:
        # Trace-time branch: sub-32-bit params go through f32 (required on v5e;
        # harmless on v6e/v7x at these sizes).
        o_ref[...] = jnp.tanh(x.astype(jnp.float32)).astype(o_ref.dtype)


def tanh_action_table(action: jax.Array) -> jax.Array:
    """tanh over the ENTIRE (T, D) action parameter in a single grid step.

    Full-array blocks are always legal regardless of (8, 128) alignment, so no
    lane padding / reshaping is needed: one DMA in, one tanh, one DMA out.
    """
    return pl.pallas_call(
        _tanh_kernel,
        out_shape=jax.ShapeDtypeStruct(action.shape, action.dtype),
    )(action)


class TanhActionModule:
    """JAX/Pallas port of torchlib's TanhActionModule (forward pass only).

    forward(h) == torch.tanh(self.action[h:h+1])  -> (1, action_dim)
    """

    def __init__(self, init_action):
        self.action = jnp.asarray(init_action)
        self.T, self.action_dim = self.action.shape

    # --- spec-faithful forward: one kernel launch + one wrapper-side slice ----
    def forward(self, h):
        table = tanh_action_table(self.action)
        # dynamic_slice clamps h into [0, T-1] (documented contract difference
        # vs. PyTorch's empty-tensor behaviour for h >= T).
        return lax.dynamic_slice_in_dim(table, jnp.asarray(h, jnp.int32), 1, axis=0)

    # --- N timestep queries amortized over ONE launch -------------------------
    def forward_batched(self, hs):
        table = tanh_action_table(self.action)
        hs = jnp.clip(jnp.asarray(hs, jnp.int32).reshape(-1), 0, self.T - 1)
        return jnp.take(table, hs, axis=0)

    # --- rollout-loop path: zero launches per query ---------------------------
    # The parameter is fixed across the H forward() calls of a single planner
    # rollout; recompute the table only after a gradient update.
    def precompute_table(self):
        return tanh_action_table(self.action)

    def forward_from_table(self, table, h):
        return lax.dynamic_slice_in_dim(table, jnp.asarray(h, jnp.int32), 1, axis=0)


if __name__ == "__main__":
    # Deterministic synthetic "init_action": planner horizon T=8, action_dim=16.
    key = jax.random.PRNGKey(0)
    T, D = 8, 16
    init_action = jax.random.normal(key, (T, D), dtype=jnp.float32)

    module = TanhActionModule(init_action)

    # --- single-timestep forward ---
    out = jax.block_until_ready(module.forward(3))
    ref = jnp.tanh(init_action[3:4])
    assert out.shape == (1, D)
    assert jnp.allclose(out, ref, atol=1e-6, rtol=1e-6)

    # --- batched forward: several planner timesteps, one launch ---
    hs = jnp.asarray([0, 3, 5, 7], dtype=jnp.int32)
    out_b = jax.block_until_ready(module.forward_batched(hs))
    ref_b = jnp.tanh(init_action[hs])
    assert out_b.shape == (4, D)
    assert jnp.allclose(out_b, ref_b, atol=1e-6, rtol=1e-6)

    # --- cached-table rollout path: zero kernel launches per query ---
    table = jax.block_until_ready(module.precompute_table())
    out_c = jax.block_until_ready(module.forward_from_table(table, 7))
    assert jnp.allclose(out_c, jnp.tanh(init_action[7:8]), atol=1e-6, rtol=1e-6)

    print("KERNEL_OK")
</pallas_src>

<mosaic_0001>
module attributes {stable_mosaic.version = 11 : i64} {
  func.func @_tanh_kernel(%arg0: memref<8x16xf32, #tpu.memory_space<vmem>>, %arg1: memref<8x16xf32, #tpu.memory_space<vmem>>) attributes {dimension_semantics = [], scalar_prefetch = 0 : i64, scratch_operands = 0 : i64, tpu.core_type = #tpu.core_type<tc>} {
    %c0 = arith.constant 0 : index
    %c0_0 = arith.constant 0 : index
    %0 = vector.load %arg0[%c0, %c0_0] : memref<8x16xf32, #tpu.memory_space<vmem>>, vector<8x16xf32>
    %1 = math.tanh %0 : vector<8x16xf32>
    %c0_1 = arith.constant 0 : index
    %c0_2 = arith.constant 0 : index
    %2 = vector.load %arg1[%c0_1, %c0_2] : memref<8x16xf32, #tpu.memory_space<vmem>>, vector<8x16xf32>
    tpu.vector_store %arg1[%c0_1, %c0_2], %1 {strides = array<i32>} : memref<8x16xf32, #tpu.memory_space<vmem>>, vector<8x16xf32>,
    return
  }
}

</mosaic_0001>

<bundles_post_ra>
// kernel: tpu_custom_call.1
= control target key start
LH: loop header
LB: loop body
LE: loop exit
PB: predicated region body
PF: predicated region fallthrough
CT: control target
= control target key end

     0   :  { %6 = vsyncpa [#allocation3], 0  ;;  %s128_s0 = inlined_call_operand.hbm [shape: f32[8,16], index: 0, kind: input, shape index: {}]   ;;  %s129_s1 = inlined_call_operand.hbm [shape: f32[8,16], index: 1, kind: output, shape index: {}]  }
   0x1   :  { %7 = vsyncpa [#allocation4], 0  ;;  %s92_s6 = smov [#allocation2]   ;;  %s44_s10 = scalar_lea.hbm %s128_s0, 128 }
   0x2   :  { %s14_s7 = sshll.u32 %s92_s6, 4  ;;  %p45_p0 = scmp.ne.s32.totalorder %s128_s0, %s44_s10  ;;  %s15_s7 = int_to_ptr.vmem [resolvable:$true] %s14_s7 }
   0x3   :  { %p48_p1 = scmp.lt.u32.totalorder %s44_s10, %s128_s0 }
   0x5   :  { %p50_p2 = pnand %p48_p1, %p45_p0 }
   0x7   :  { %53 = shalt.err (!%p50_p2)
}
   0x8   :  { %s54_s15 = scalar_lea.vmem %s15_s7, 128  ;;  %p59_p4 = scmp.lt.s32.totalorder %s15_s7, %s15_s7 }
   0x9   :  { %p55_p3 = scmp.ne.s32.totalorder %s15_s7, %s54_s15  ;;  %p60_p5 = scmp.lt.s32.totalorder %s54_s15, %s54_s15 }
   0xb   :  { %p61_p6 = por %p60_p5, %p59_p4 }
   0xd   :  { %p62_p7 = pnand %p61_p6, %p55_p3 }
   0xf   :  { %65 = shalt.err (!%p62_p7)
}
  0x10   :  { %17 = dma.hbm_to_vmem [thread:$0]  %s128_s0, 128, %s15_s7, [#allocation3]  }
  0x11   :  { %88 = dma.done.wait [#allocation3], 128  }
  0x12   :  { %89 = vsyncadd [#allocation3], 4294967168  ;;  %v21_v0 = vld [vmem:[#allocation2] sm:$0xff]  ;;  %s93_s18 = smov [#allocation5]   ;;  %vm23_vm0 = vcmask 130048  }
  0x13   :  { %42 = vtanh.f32 %v21_v0  ;;  %s31_s19 = sshll.u32 %s93_s18, 4  ;;  %s32_s19 = int_to_ptr.vmem [resolvable:$true] %s31_s19 }
  0x14   :  { %s66_s20 = scalar_lea.vmem %s32_s19, 128  ;;  %p71_p9 = scmp.lt.s32.totalorder %s32_s19, %s32_s19 }
  0x15   :  { %p67_p8 = scmp.ne.s32.totalorder %s32_s19, %s66_s20  ;;  %p72_p10 = scmp.lt.s32.totalorder %s66_s20, %s66_s20 }
  0x17   :  { %p73_p11 = por %p72_p10, %p71_p9 }
  0x19   :  { %p74_p12 = pnand %p73_p11, %p67_p8 }
  0x1d   :  { %v43_v1 = vpop.eup %42 }
  0x1e   :  { %24 = vst.msk [vmem:[#allocation5] sm:$0xff] %vm23_vm0, %v43_v1 }
  0x1f   :  { %77 = shalt.err (!%p74_p12)
}
  0x20   :  { %s78_s0 = scalar_lea.hbm %s129_s1, 128 }
  0x21   :  { %p79_p13 = scmp.ne.s32.totalorder %s129_s1, %s78_s0  ;;  %p82_p0 = scmp.lt.u32.totalorder %s78_s0, %s129_s1 }
  0x23   :  { %p84_p1 = pnand %p82_p0, %p79_p13 }
  0x25   :  { %87 = shalt.err (!%p84_p1)
}
  0x26   :  { %34 = dma.vmem_to_hbm [thread:$0]  %s32_s19, 128, %s129_s1, [#allocation4]  }
  0x27   :  { %90 = dma.done.wait [#allocation4], 128  }
  0x28   :  { %91 = vsyncadd [#allocation4], 4294967168 }
  0x29   :  { %38 = vsyncpa [#allocation3], 1 }
  0x2a   :  { %39 = vsyncpa [#allocation4], 1 }

</bundles_post_ra>
